<compile_context>
chip_gen: v7x
topology: tpu7x:2x2x1
jax: 0.10.0
libtpu: 0.0.40
codegen_flags: <defaults>
</compile_context>

<pallas_src>
import jax
import jax.numpy as jnp
from jax.experimental import pallas as pl
from jax.experimental.pallas import tpu as pltpu


def _round_up(n, m):
    return ((n + m - 1) // m) * m


def columnfc_kernel(x_ref,
                    w1_ref, b1_ref,
                    w2_ref, b2_ref,
                    w3_ref, b3_ref,
                    o_ref):
    # Fused hot path: fc1 -> relu -> (drop1 = identity)
    #                 -> fc2 -> relu -> (drop2 = identity) -> fc3.
    # All matmuls hit the MXU with f32 accumulation; bias add + ReLU stay f32
    # so the vector path is unaffected by the (optional) bf16 operand dtype.
    mxu_dt = w1_ref.dtype                       # bf16 (default) or f32 operands

    h = jnp.dot(x_ref[...], w1_ref[...], preferred_element_type=jnp.float32)
    h = jnp.maximum(h + b1_ref[...], 0.0)       # relu(fc1); drop1 = identity

    h = jnp.dot(h.astype(mxu_dt), w2_ref[...], preferred_element_type=jnp.float32)
    h = jnp.maximum(h + b2_ref[...], 0.0)       # relu(fc2); drop2 = identity

    out = jnp.dot(h.astype(mxu_dt), w3_ref[...], preferred_element_type=jnp.float32)
    o_ref[...] = (out + b3_ref[...]).astype(o_ref.dtype)


def columnfc_forward(x, params, *, batch_tile=512, use_bf16=True,
                     out_dtype=jnp.float32):
    """x: (B, input_dim). params: w_i of shape (in, out), b_i of shape (1, out).

    use_bf16=True (default) runs bf16 MXU operands with f32 accumulation
    (fastest on v5e/v6e/v7x); use_bf16=False gives exact f32 parity with the
    PyTorch reference.  out_dtype may be set to bf16 to halve the writeback if
    the consumer tolerates it.
    """
    B, d_in = x.shape
    w1, b1 = params["w1"], params["b1"]
    w2, b2 = params["w2"], params["b2"]
    w3, b3 = params["w3"], params["b3"]
    h1, h2 = w1.shape[1], w2.shape[1]
    d_out = w3.shape[1]

    mxu_dt = jnp.bfloat16 if use_bf16 else jnp.float32
    # Cast x in the wrapper (single round to bf16, numerically identical to an
    # in-kernel cast) so the dominant streamed input is half-width in HBM.
    x_c = x.astype(mxu_dt)
    w1_c = w1.astype(mxu_dt)
    w2_c = w2.astype(mxu_dt)
    w3_c = w3.astype(mxu_dt)
    b1_c = b1.astype(jnp.float32)
    b2_c = b2.astype(jnp.float32)
    b3_c = b3.astype(jnp.float32)

    # Batch tiling:
    #  * big tiles amortize the ~0.35 us grid-step overhead (~85% of roofline
    #    at 512 for a mem-bound kernel);
    #  * cap at ceil(B/2) rounded up to the 8-row sublane so the grid has >=2
    #    parallel steps whenever possible -> both v7x TensorCores are used;
    #  * no batch padding: grid = cdiv(B, tile); the partial last block's OOB
    #    rows are garbage but rows are independent and OOB stores are masked.
    tile = max(8, min(batch_tile, _round_up(pl.cdiv(B, 2), 8)))
    grid = (pl.cdiv(B, tile),)

    # Constant-index blocks (weights/biases): Pallas DMAs them once and skips
    # re-copies across grid steps since the block index never changes.
    def full(arr):
        return pl.BlockSpec(arr.shape, lambda i: (0,) * arr.ndim)

    flops = 2 * B * (d_in * h1 + h1 * h2 + h2 * d_out)
    bytes_accessed = int(
        x_c.size * x_c.dtype.itemsize
        + sum(a.size * a.dtype.itemsize
              for a in (w1_c, b1_c, w2_c, b2_c, w3_c, b3_c))
        + B * d_out * jnp.dtype(out_dtype).itemsize)

    # Output last dim (100) is below a full 128-lane vreg -> masked stores; we
    # accept that because it avoids a whole extra XLA pad/slice pass over HBM.
    out = pl.pallas_call(
        columnfc_kernel,
        out_shape=jax.ShapeDtypeStruct((B, d_out), out_dtype),
        grid_spec=pl.GridSpec(
            grid=grid,
            in_specs=[
                pl.BlockSpec((tile, d_in), lambda i: (i, 0)),   # x batch tile
                full(w1_c), full(b1_c),
                full(w2_c), full(b2_c),
                full(w3_c), full(b3_c),
            ],
            out_specs=pl.BlockSpec((tile, d_out), lambda i: (i, 0)),
        ),
        compiler_params=pltpu.CompilerParams(
            dimension_semantics=("parallel",),
            vmem_limit_bytes=32 * 1024 * 1024),
        cost_estimate=pl.CostEstimate(
            flops=flops, transcendentals=0, bytes_accessed=bytes_accessed),
    )(x_c, w1_c, b1_c, w2_c, b2_c, w3_c, b3_c)

    return out


def init_params(key, input_dim=100, output_dim=100):
    """Deterministic init mimicking nn.Linear default (uniform +/- 1/sqrt(fan_in)).
    Weights stored as (in_features, out_features)."""
    dims = [(input_dim, 256), (256, 128), (128, output_dim)]
    params = {}
    for idx, (fan_in, fan_out) in enumerate(dims, start=1):
        key, kw, kb = jax.random.split(key, 3)
        bound = 1.0 / jnp.sqrt(jnp.float32(fan_in))
        params[f"w{idx}"] = jax.random.uniform(
            kw, (fan_in, fan_out), jnp.float32, minval=-bound, maxval=bound)
        params[f"b{idx}"] = jax.random.uniform(
            kb, (1, fan_out), jnp.float32, minval=-bound, maxval=bound)
    return params


def columnfc_reference(x, params):
    h = jnp.maximum(x @ params["w1"] + params["b1"], 0.0)
    h = jnp.maximum(h @ params["w2"] + params["b2"], 0.0)
    return h @ params["w3"] + params["b3"]


if __name__ == "__main__":
    key = jax.random.PRNGKey(0)
    key_x1, key_x2, key_p = jax.random.split(key, 3)

    input_dim, output_dim = 100, 100
    params = init_params(key_p, input_dim=input_dim, output_dim=output_dim)

    # 1) Exact-parity path: f32 MXU operands, tight tolerance.
    x1 = jax.random.normal(key_x1, (8, input_dim), jnp.float32)
    out1 = jax.block_until_ready(columnfc_forward(x1, params, use_bf16=False))
    ref1 = columnfc_reference(x1, params)
    assert out1.shape == (8, output_dim)
    assert jnp.allclose(out1, ref1, atol=1e-5, rtol=1e-5), "f32 mismatch vs reference"

    # 2) Default fast path: bf16 MXU operands; batch chosen so the grid has a
    #    partial last block (exercises the masked-store path).
    x2 = jax.random.normal(key_x2, (20, input_dim), jnp.float32)
    out2 = jax.block_until_ready(columnfc_forward(x2, params))
    ref2 = columnfc_reference(x2, params)
    assert out2.shape == (20, output_dim)
    assert jnp.allclose(out2, ref2, atol=5e-2, rtol=5e-2), "bf16 mismatch vs reference"

    print("KERNEL_OK")
</pallas_src>

<mosaic_0001>
module attributes {stable_mosaic.version = 11 : i64} {
  func.func @columnfc_kernel(%arg0: i32, %arg1: memref<8x100xf32, #tpu.memory_space<vmem>>, %arg2: memref<100x256xf32, #tpu.memory_space<vmem>>, %arg3: memref<1x256xf32, #tpu.memory_space<vmem>>, %arg4: memref<256x128xf32, #tpu.memory_space<vmem>>, %arg5: memref<1x128xf32, #tpu.memory_space<vmem>>, %arg6: memref<128x100xf32, #tpu.memory_space<vmem>>, %arg7: memref<1x100xf32, #tpu.memory_space<vmem>>, %arg8: memref<8x100xf32, #tpu.memory_space<vmem>>) attributes {dimension_semantics = [#tpu.dimension_semantics<parallel>], iteration_bounds = array<i64: 1>, scalar_prefetch = 0 : i64, scratch_operands = 0 : i64, tpu.core_type = #tpu.core_type<tc>, window_params = [{transform_indices = @transform_0, window_bounds = array<i64: 8, 100>}, {pipeline_mode = #tpu.pipeline_mode<synchronous>, transform_indices = @transform_1, window_bounds = array<i64: 100, 256>}, {pipeline_mode = #tpu.pipeline_mode<synchronous>, transform_indices = @transform_2, window_bounds = array<i64: 1, 256>}, {pipeline_mode = #tpu.pipeline_mode<synchronous>, transform_indices = @transform_3, window_bounds = array<i64: 256, 128>}, {pipeline_mode = #tpu.pipeline_mode<synchronous>, transform_indices = @transform_4, window_bounds = array<i64: 1, 128>}, {pipeline_mode = #tpu.pipeline_mode<synchronous>, transform_indices = @transform_5, window_bounds = array<i64: 128, 100>}, {pipeline_mode = #tpu.pipeline_mode<synchronous>, transform_indices = @transform_6, window_bounds = array<i64: 1, 100>}, {transform_indices = @transform_7, window_bounds = array<i64: 8, 100>}]} {
    %c0 = arith.constant 0 : index
    %c0_0 = arith.constant 0 : index
    %0 = vector.load %arg1[%c0, %c0_0] : memref<8x100xf32, #tpu.memory_space<vmem>>, vector<8x100xf32>
    %c0_1 = arith.constant 0 : index
    %c0_2 = arith.constant 0 : index
    %1 = vector.load %arg2[%c0_1, %c0_2] : memref<100x256xf32, #tpu.memory_space<vmem>>, vector<100x256xf32>
    %cst = arith.constant dense<0.000000e+00> : vector<8x256xf32>
    %2 = tpu.matmul %0, %1, %cst {dimension_numbers = #tpu.dot_dimension_numbers<[1], [0], [0], [1], [0, 0, 1, 1], [], []>} : vector<8x100xf32>, vector<100x256xf32>, vector<8x256xf32> -> vector<8x256xf32>
    %c0_3 = arith.constant 0 : index
    %c0_4 = arith.constant 0 : index
    %3 = vector.load %arg3[%c0_3, %c0_4] : memref<1x256xf32, #tpu.memory_space<vmem>>, vector<1x256xf32>
    %4 = vector.broadcast %3 : vector<1x256xf32> to vector<8x256xf32>
    %5 = arith.addf %2, %4 : vector<8x256xf32>
    %cst_5 = arith.constant 0.000000e+00 : f32
    %6 = vector.broadcast %cst_5 : f32 to vector<8x256xf32>
    %7 = arith.maximumf %5, %6 : vector<8x256xf32>
    %c0_6 = arith.constant 0 : index
    %c0_7 = arith.constant 0 : index
    %8 = vector.load %arg4[%c0_6, %c0_7] : memref<256x128xf32, #tpu.memory_space<vmem>>, vector<256x128xf32>
    %cst_8 = arith.constant dense<0.000000e+00> : vector<8x128xf32>
    %9 = tpu.matmul %7, %8, %cst_8 {dimension_numbers = #tpu.dot_dimension_numbers<[1], [0], [0], [1], [0, 0, 1, 1], [], []>} : vector<8x256xf32>, vector<256x128xf32>, vector<8x128xf32> -> vector<8x128xf32>
    %c0_9 = arith.constant 0 : index
    %c0_10 = arith.constant 0 : index
    %10 = vector.load %arg5[%c0_9, %c0_10] : memref<1x128xf32, #tpu.memory_space<vmem>>, vector<1x128xf32>
    %11 = vector.broadcast %10 : vector<1x128xf32> to vector<8x128xf32>
    %12 = arith.addf %9, %11 : vector<8x128xf32>
    %cst_11 = arith.constant 0.000000e+00 : f32
    %13 = vector.broadcast %cst_11 : f32 to vector<8x128xf32>
    %14 = arith.maximumf %12, %13 : vector<8x128xf32>
    %c0_12 = arith.constant 0 : index
    %c0_13 = arith.constant 0 : index
    %15 = vector.load %arg6[%c0_12, %c0_13] : memref<128x100xf32, #tpu.memory_space<vmem>>, vector<128x100xf32>
    %cst_14 = arith.constant dense<0.000000e+00> : vector<8x100xf32>
    %16 = tpu.matmul %14, %15, %cst_14 {dimension_numbers = #tpu.dot_dimension_numbers<[1], [0], [0], [1], [0, 0, 1, 1], [], []>} : vector<8x128xf32>, vector<128x100xf32>, vector<8x100xf32> -> vector<8x100xf32>
    %c0_15 = arith.constant 0 : index
    %c0_16 = arith.constant 0 : index
    %17 = vector.load %arg7[%c0_15, %c0_16] : memref<1x100xf32, #tpu.memory_space<vmem>>, vector<1x100xf32>
    %18 = vector.broadcast %17 : vector<1x100xf32> to vector<8x100xf32>
    %19 = arith.addf %16, %18 : vector<8x100xf32>
    %c0_17 = arith.constant 0 : index
    %c0_18 = arith.constant 0 : index
    %20 = vector.load %arg8[%c0_17, %c0_18] : memref<8x100xf32, #tpu.memory_space<vmem>>, vector<8x100xf32>
    tpu.vector_store %arg8[%c0_17, %c0_18], %19 {strides = array<i32>} : memref<8x100xf32, #tpu.memory_space<vmem>>, vector<8x100xf32>,
    return
  }
  func.func @transform_0(%arg0: i32) -> (i32, i32) {
    %c0_i32 = arith.constant 0 : i32
    %c0_i32_0 = arith.constant 0 : i32
    return %arg0, %c0_i32 : i32, i32
  }
  func.func @transform_1(%arg0: i32) -> (i32, i32) {
    %c0_i32 = arith.constant 0 : i32
    %c0_i32_0 = arith.constant 0 : i32
    %c0_i32_1 = arith.constant 0 : i32
    return %c0_i32, %c0_i32_0 : i32, i32
  }
  func.func @transform_2(%arg0: i32) -> (i32, i32) {
    %c0_i32 = arith.constant 0 : i32
    %c0_i32_0 = arith.constant 0 : i32
    %c0_i32_1 = arith.constant 0 : i32
    return %c0_i32, %c0_i32_0 : i32, i32
  }
  func.func @transform_3(%arg0: i32) -> (i32, i32) {
    %c0_i32 = arith.constant 0 : i32
    %c0_i32_0 = arith.constant 0 : i32
    %c0_i32_1 = arith.constant 0 : i32
    return %c0_i32, %c0_i32_0 : i32, i32
  }
  func.func @transform_4(%arg0: i32) -> (i32, i32) {
    %c0_i32 = arith.constant 0 : i32
    %c0_i32_0 = arith.constant 0 : i32
    %c0_i32_1 = arith.constant 0 : i32
    return %c0_i32, %c0_i32_0 : i32, i32
  }
  func.func @transform_5(%arg0: i32) -> (i32, i32) {
    %c0_i32 = arith.constant 0 : i32
    %c0_i32_0 = arith.constant 0 : i32
    %c0_i32_1 = arith.constant 0 : i32
    return %c0_i32, %c0_i32_0 : i32, i32
  }
  func.func @transform_6(%arg0: i32) -> (i32, i32) {
    %c0_i32 = arith.constant 0 : i32
    %c0_i32_0 = arith.constant 0 : i32
    %c0_i32_1 = arith.constant 0 : i32
    return %c0_i32, %c0_i32_0 : i32, i32
  }
  func.func @transform_7(%arg0: i32) -> (i32, i32) {
    %c0_i32 = arith.constant 0 : i32
    %c0_i32_0 = arith.constant 0 : i32
    return %arg0, %c0_i32 : i32, i32
  }
}

</mosaic_0001>

<bundles_post_ra>
// kernel: tpu_custom_call.1
= control target key start
LH: loop header
LB: loop body
LE: loop exit
PB: predicated region body
PF: predicated region fallthrough
CT: control target
= control target key end

     0   :  { %12 = vsyncpa [#allocation3], 0  ;;  %s825_s0 = inlined_call_operand.vmem [shape: f32[8,100], index: 0, kind: input, shape index: {}]   ;;  %s826_s1 = inlined_call_operand.vmem [shape: f32[100,256], index: 1, kind: input, shape index: {}]   ;;  %s827_s2 = inlined_call_operand.vmem [shape: f32[1,256], index: 2, kind: input, shape index: {}]   ;;  %s828_s3 = inlined_call_operand.hbm [shape: f32[256,128], index: 3, kind: input, shape index: {}]   ;;  %s829_s4 = inlined_call_operand.vmem [shape: f32[1,128], index: 4, kind: input, shape index: {}]   ;;  %s830_s5 = inlined_call_operand.vmem [shape: f32[128,100], index: 5, kind: input, shape index: {}]   ;;  %s831_s6 = inlined_call_operand.vmem [shape: f32[1,100], index: 6, kind: input, shape index: {}]   ;;  %s832_s7 = inlined_call_operand.hbm [shape: f32[8,100], index: 7, kind: output, shape index: {}]  }
   0x1   :  { %13 = vsyncpa [#allocation4], 0  ;;  %s610_s24 = smov [#allocation2]   ;;  %s562_s28 = scalar_lea.hbm %s828_s3, 4096 }
   0x2   :  { %s25_s25 = sshll.u32 %s610_s24, 4  ;;  %p563_p0 = scmp.ne.s32.totalorder %s828_s3, %s562_s28  ;;  %s26_s25 = int_to_ptr.vmem [resolvable:$true] %s25_s25 }
   0x3   :  { %p566_p1 = scmp.lt.u32.totalorder %s562_s28, %s828_s3 }
   0x5   :  { %p568_p2 = pnand %p566_p1, %p563_p0 }
   0x7   :  { %571 = shalt.err (!%p568_p2)
}
   0x8   :  { %s572_s10 = scalar_lea.vmem %s26_s25, 4096  ;;  %p577_p4 = scmp.lt.s32.totalorder %s26_s25, %s26_s25 }
   0x9   :  { %p573_p3 = scmp.ne.s32.totalorder %s26_s25, %s572_s10  ;;  %p578_p5 = scmp.lt.s32.totalorder %s572_s10, %s572_s10 }
   0xb   :  { %p579_p6 = por %p578_p5, %p577_p4 }
   0xd   :  { %p580_p7 = pnand %p579_p6, %p573_p3 }
   0xf   :  { %583 = shalt.err (!%p580_p7)
}
  0x10   :  { %s611_s11 = smov 128   ;;  %s612_s12 = smov 8  }
  0x11   :  { %31 = dma.hbm_to_vmem [thread:$0]  %s828_s3, 4096, %s26_s25, [#allocation3], %s611_s11, %s611_s11, %s612_s12  }
  0x12   :  { %606 = dma.done.wait [#allocation3], 4096  }
  0x13   :  { %607 = vsyncadd [#allocation3], 4294963200  ;;  %v613_v0 = vmov 0.0   ;;  %v43_v1 = vld [vmem:[%s826_s1 + $0x8] sm:$0xff]  ;;  %v45_v2 = vld [vmem:[%s826_s1 + $0x18] sm:$0xff]  ;;  %vm84_vm0 = vcmask 1043456  }
  0x14   :  { %155 = vmatprep.mubr.f32.mxu0 %v613_v0  ;;  %v42_v3 = vld [vmem:[%s826_s1] sm:$0xff]  ;;  %v475_v4 = vpack.c.bf16 %v45_v2, %v43_v1  ;;  %v44_v5 = vld [vmem:[%s826_s1 + $0x10] sm:$0xff]  ;;  %v47_v6 = vld [vmem:[%s826_s1 + $0x28] sm:$0xff]  ;;  %vm80_vm1 = vcmask 818176   ;;  %vm615_vm2 = vmmov 0  }
  0x15   :  { %v49_v7 = vld [vmem:[%s826_s1 + $0x38] sm:$0xff]  ;;  %v477_v8 = vpack.c.bf16 %v44_v5, %v42_v3  ;;  %v46_v10 = vld [vmem:[%s826_s1 + $0x20] sm:$0xff]  ;;  %v48_v11 = vld [vmem:[%s826_s1 + $0x30] sm:$0xff] }
  0x16   :  { %v479_v9 = vpack.c.bf16 %v49_v7, %v47_v6  ;;  %v51_v12 = vld [vmem:[%s826_s1 + $0x48] sm:$0xff]  ;;  %476 = vmatprep.subr.bf16.mxu0 %v475_v4  ;;  %v53_v13 = vld [vmem:[%s826_s1 + $0x58] sm:$0xff]  ;;  %v481_v14 = vpack.c.bf16 %v48_v11, %v46_v10  ;;  %v50_v16 = vld [vmem:[%s826_s1 + $0x40] sm:$0xff] }
  0x17   :  { %478 = vmatpush1.bf16.msra.mxu0 %v477_v8  ;;  %v483_v15 = vpack.c.bf16 %v53_v13, %v51_v12  ;;  %v52_v17 = vld [vmem:[%s826_s1 + $0x50] sm:$0xff]  ;;  %v55_v18 = vld [vmem:[%s826_s1 + $0x68] sm:$0xff]  ;;  %v57_v19 = vld [vmem:[%s826_s1 + $0x78] sm:$0xff] }
  0x18   :  { %480 = vmatprep.subr.bf16.mxu0 %v479_v9  ;;  %v54_v20 = vld [vmem:[%s826_s1 + $0x60] sm:$0xff]  ;;  %v485_v21 = vpack.c.bf16 %v52_v17, %v50_v16  ;;  %v56_v22 = vld [vmem:[%s826_s1 + $0x70] sm:$0xff]  ;;  %v59_v23 = vld [vmem:[%s826_s1 + $0x88] sm:$0xff]  ;;  %v487_v25 = vpack.c.bf16 %v57_v19, %v55_v18 }
  0x19   :  { %v61_v24 = vld [vmem:[%s826_s1 + $0x98] sm:$0xff]  ;;  %v180_v26 = vld [vmem:[#allocation2 + $0x80] sm:$0xff]  ;;  %v181_v27 = vld [vmem:[#allocation2 + $0x88] sm:$0xff]  ;;  %v489_v38 = vpack.c.bf16 %v56_v22, %v54_v20 }
  0x1a   :  { %v164_v28 = vld [vmem:[#allocation2] sm:$0xff]  ;;  %v499_v29 = vpack.c.bf16 %v181_v27, %v180_v26  ;;  %v165_v30 = vld [vmem:[#allocation2 + $0x8] sm:$0xff]  ;;  %v182_v31 = vld [vmem:[#allocation2 + $0x90] sm:$0xff]  ;;  %v491_v40 = vpack.c.bf16 %v61_v24, %v59_v23 }
  0x1b   :  { %482 = vmatpush1.bf16.msra.mxu0 %v481_v14  ;;  %v183_v32 = vld [vmem:[#allocation2 + $0x98] sm:$0xff]  ;;  %v501_v33 = vpack.c.bf16 %v165_v30, %v164_v28  ;;  %v166_v35 = vld [vmem:[#allocation2 + $0x10] sm:$0xff]  ;;  %v184_v37 = vld [vmem:[#allocation2 + $0xa0] sm:$0xff]  ;;  %v614_v28 = vmov 0.0|0.0  }
  0x1c   :  { %484 = vmatprep.subr.bf16.mxu0 %v483_v15  ;;  %v503_v34 = vpack.c.bf16 %v183_v32, %v182_v31  ;;  %v167_v36 = vld [vmem:[#allocation2 + $0x18] sm:$0xff]  ;;  %500 = vmatprep.subr.bf16.mxu1 %v499_v29  ;;  %v185_v39 = vld [vmem:[#allocation2 + $0xa8] sm:$0xff]  ;;  %v58_v41 = vld [vmem:[%s826_s1 + $0x80] sm:$0xff] }
  0x1d   :  { %v60_v42 = vld [vmem:[%s826_s1 + $0x90] sm:$0xff]  ;;  %v63_v43 = vld [vmem:[%s826_s1 + $0xa8] sm:$0xff]  ;;  %502 = vmatpush3.bf16.msra.mxu1 %v501_v33  ;;  %v505_v44 = vpack.c.bf16 %v167_v36, %v166_v35  ;;  %v65_v45 = vld [vmem:[%s826_s1 + $0xb8] sm:$0xff]  ;;  %v507_v46 = vpack.c.bf16 %v185_v39, %v184_v37 }
  0x1e   :  { %504 = vmatprep.subr.bf16.mxu1 %v503_v34  ;;  %v168_v47 = vld [vmem:[#allocation2 + $0x20] sm:$0xff]  ;;  %v169_v48 = vld [vmem:[#allocation2 + $0x28] sm:$0xff]  ;;  %v186_v49 = vld [vmem:[#allocation2 + $0xb0] sm:$0xff]  ;;  %v493_v51 = vpack.c.bf16 %v60_v42, %v58_v41  ;;  %v495_v52 = vpack.c.bf16 %v65_v45, %v63_v43 }
  0x1f   :  { %486 = vmatpush1.bf16.msra.mxu0 %v485_v21  ;;  %v187_v50 = vld [vmem:[#allocation2 + $0xb8] sm:$0xff]  ;;  %v62_v53 = vld [vmem:[%s826_s1 + $0xa0] sm:$0xff]  ;;  %v64_v54 = vld [vmem:[%s826_s1 + $0xb0] sm:$0xff]  ;;  %v509_v55 = vpack.c.bf16 %v169_v48, %v168_v47 }
  0x20   :  { %488 = vmatprep.subr.bf16.mxu0 %v487_v25  ;;  %v511_v56 = vpack.c.bf16 %v187_v50, %v186_v49  ;;  %v170_v57 = vld [vmem:[#allocation2 + $0x30] sm:$0xff]  ;;  %v171_v58 = vld [vmem:[#allocation2 + $0x38] sm:$0xff]  ;;  %v188_v59 = vld [vmem:[#allocation2 + $0xc0] sm:$0xff]  ;;  %v497_v61 = vpack.c.bf16 %v64_v54, %v62_v53 }
  0x21   :  { %506 = vmatpush3.bf16.msra.mxu1 %v505_v44  ;;  %v189_v60 = vld [vmem:[#allocation2 + $0xc8] sm:$0xff]  ;;  %v513_v62 = vpack.c.bf16 %v171_v58, %v170_v57  ;;  %v172_v2 = vld [vmem:[#allocation2 + $0x40] sm:$0xff]  ;;  %v190_v4 = vld [vmem:[#allocation2 + $0xd0] sm:$0xff]  ;;  %v70_v44 = vlaneseq }
  0x22   :  { %508 = vmatprep.subr.bf16.mxu1 %v507_v46  ;;  %v67_v63 = vld [vmem:[%s826_s1 + $0xc8] sm:$0xf]  ;;  %v515_v1 = vpack.c.bf16 %v189_v60, %v188_v59  ;;  %v191_v5 = vld [vmem:[#allocation2 + $0xd8] sm:$0xff]  ;;  %v66_v6 = vld [vmem:[%s826_s1 + $0xc0] sm:$0xf] }
  0x23   :  { %490 = vmatpush1.bf16.msra.mxu0 %v489_v38  ;;  %v173_v3 = vld [vmem:[#allocation2 + $0x48] sm:$0xff]  ;;  %v41_v8 = vld [vmem:[%s825_s0] sm:$0xff]  ;;  %v519_v9 = vpack.c.bf16 %v191_v5, %v190_v4  ;;  %v174_v10 = vld [vmem:[#allocation2 + $0x50] sm:$0xff]  ;;  %v71_v45 = vshrl.u32 %v70_v44, 7 }
  0x24   :  { %492 = vmatprep.subr.bf16.mxu0 %v491_v40  ;;  %v517_v7 = vpack.c.bf16 %v173_v3, %v172_v2  ;;  %v175_v11 = vld [vmem:[#allocation2 + $0x58] sm:$0xff]  ;;  %v192_v12 = vld [vmem:[#allocation2 + $0xe0] sm:$0xff]  ;;  %v193_v13 = vld [vmem:[#allocation2 + $0xe8] sm:$0xff] }
  0x25   :  { %510 = vmatpush3.bf16.msra.mxu1 %v509_v55  ;;  %v521_v14 = vpack.c.bf16 %v175_v11, %v174_v10  ;;  %v523_v15 = vpack.c.bf16 %v193_v13, %v192_v12  ;;  %v176_v16 = vld [vmem:[#allocation2 + $0x60] sm:$0xff]  ;;  %v177_v17 = vld [vmem:[#allocation2 + $0x68] sm:$0xff]  ;;  %v194_v19 = vld [vmem:[#allocation2 + $0xf0] sm:$0xff]  ;;  %v72_v46 = vsub.s32 0, %v71_v45  ;;  %v76_v48 = vsub.s32 1, %v71_v45 }
  0x26   :  { %512 = vmatprep.subr.bf16.mxu1 %v511_v56  ;;  %v525_v18 = vpack.c.bf16 %v177_v17, %v176_v16  ;;  %v195_v20 = vld [vmem:[#allocation2 + $0xf8] sm:$0xff]  ;;  %v178_v22 = vld [vmem:[#allocation2 + $0x70] sm:$0xff]  ;;  %v274_v25 = vld [vmem:[%s830_s5] sm:$0xff] }
  0x27   :  { %494 = vmatpush1.bf16.msra.mxu0 %v493_v51  ;;  %v527_v21 = vpack.c.bf16 %v195_v20, %v194_v19  ;;  %v179_v23 = vld [vmem:[#allocation2 + $0x78] sm:$0xff]  ;;  %v275_v26 = vld [vmem:[%s830_s5 + $0x8] sm:$0xff]  ;;  %v276_v27 = vld [vmem:[%s830_s5 + $0x10] sm:$0xff] }
  0x28   :  { %496 = vmatprep.subr.bf16.mxu0 %v495_v52  ;;  %v529_v24 = vpack.c.bf16 %v179_v23, %v178_v22  ;;  %v532_v29 = vpack.c.bf16 %v275_v26, %v274_v25  ;;  %v277_v30 = vld [vmem:[%s830_s5 + $0x18] sm:$0xff]  ;;  %v278_v32 = vld [vmem:[%s830_s5 + $0x20] sm:$0xff]  ;;  %v279_v33 = vld [vmem:[%s830_s5 + $0x28] sm:$0xff] }
  0x29   :  { %514 = vmatpush3.bf16.msra.mxu1 %v513_v62  ;;  %v535_v31 = vpack.c.bf16 %v277_v30, %v276_v27  ;;  %v538_v34 = vpack.c.bf16 %v279_v33, %v278_v32  ;;  %v280_v35 = vld [vmem:[%s830_s5 + $0x30] sm:$0xff]  ;;  %v281_v36 = vld [vmem:[%s830_s5 + $0x38] sm:$0xff]  ;;  %v282_v38 = vld [vmem:[%s830_s5 + $0x40] sm:$0xff] }
  0x2a   :  { %516 = vmatprep.subr.bf16.mxu1 %v515_v1  ;;  %v541_v37 = vpack.c.bf16 %v281_v36, %v280_v35  ;;  %v283_v39 = vld [vmem:[%s830_s5 + $0x48] sm:$0xff]  ;;  %v284_v41 = vld [vmem:[%s830_s5 + $0x50] sm:$0xff]  ;;  %v285_v42 = vld [vmem:[%s830_s5 + $0x58] sm:$0xff] }
  0x2b   :  { %498 = vmatpush1.bf16.msra.mxu0 %v497_v61  ;;  %v544_v40 = vpack.c.bf16 %v283_v39, %v282_v38  ;;  %v547_v43 = vpack.c.bf16 %v285_v42, %v284_v41  ;;  %v68_v47 = vld [vmem:[%s827_s2] sm:$0x3]  ;;  %v287_v58 = vld [vmem:[%s830_s5 + $0x68] sm:$0xff]  ;;  %v288_v60 = vld [vmem:[%s830_s5 + $0x70] sm:$0xff] }
  0x2c   :  { %383 = vmatprep.subr.msk.mxu0 %vm84_vm0, %v67_v63  ;;  %v73_v49 = vrot.slane %v68_v47, %v72_v46  ;;  %v77_v50 = vrot.slane %v68_v47, %v76_v48  ;;  %v286_v57 = vld [vmem:[%s830_s5 + $0x60] sm:$0xff]  ;;  %v289_v61 = vld [vmem:[%s830_s5 + $0x78] sm:$0xff]  ;;  %s616_s5 = smov [#allocation5]  }
  0x2d   :  { %518 = vmatpush3.bf16.msra.mxu1 %v517_v7  ;;  %v550_v59 = vpack.c.bf16 %v287_v58, %v286_v57  ;;  %v553_v62 = vpack.c.bf16 %v289_v61, %v288_v60  ;;  %v386_v1 = vld [vmem:[%s829_s4] ss:$0 sm:$0xff]  ;;  %s374_s29 = sshll.u32 %s616_s5, 4  ;;  %s375_s29 = int_to_ptr.vmem [resolvable:$true] %s374_s29 }
  0x2e   :  { %520 = vmatprep.subr.bf16.mxu1 %v519_v9  ;;  %s584_s30 = scalar_lea.vmem %s375_s29, 128  ;;  %p589_p9 = scmp.lt.s32.totalorder %s375_s29, %s375_s29 }
  0x2f   :  { %384 = vmatpush1.msk.msra.mxu0 %vm84_vm0, %v66_v6  ;;  %v387_v6 = vld [vmem:[%s831_s6] ss:$0 sm:$0xff]  ;;  %p585_p8 = scmp.ne.s32.totalorder %s375_s29, %s584_s30  ;;  %p590_p10 = scmp.lt.s32.totalorder %s584_s30, %s584_s30 }
  0x30   :  { %385 = vmatmul.mubr.msk.f32.vlgmr.msra.gmra.mrb[0].mxu0 %vm80_vm1, %v41_v8  ;;  %531 = vmatprep.subr.bf16.mxu0 %v614_v28 }
  0x31   :  { %522 = vmatpush3.bf16.msra.mxu1 %v521_v14  ;;  %533 = vmatpush3.bf16.msra.mxu0 %v532_v29  ;;  %p591_p11 = por %p590_p10, %p589_p9 }
  0x32   :  { %524 = vmatprep.subr.bf16.mxu1 %v523_v15  ;;  %534 = vmatprep.subr.bf16.mxu0 %v614_v28 }
  0x33   :  { %472 = vmatprep.mubr.msk.f32.mxu0 %vm615_vm2, %v613_v0  ;;  %p592_p12 = pnand %p591_p11, %p585_p8 }
  0x35   :  { %526 = vmatpush3.bf16.msra.mxu1 %v525_v18  ;;  %536 = vmatpush3.bf16.msra.mxu0 %v535_v31 }
  0x36   :  { %528 = vmatprep.subr.bf16.mxu1 %v527_v21  ;;  %537 = vmatprep.subr.bf16.mxu0 %v614_v28 }
  0x39   :  { %530 = vmatpush3.bf16.msra.mxu1 %v529_v24  ;;  %539 = vmatpush3.bf16.msra.mxu0 %v538_v34 }
  0x3a   :  { %540 = vmatprep.subr.bf16.mxu0 %v614_v28 }
  0x3d   :  { %542 = vmatpush3.bf16.msra.mxu0 %v541_v37 }
  0x3e   :  { %543 = vmatprep.subr.bf16.mxu0 %v614_v28 }
  0x41   :  { %545 = vmatpush3.bf16.msra.mxu0 %v544_v40 }
  0x42   :  { %546 = vmatprep.subr.bf16.mxu0 %v614_v28 }
  0x45   :  { %548 = vmatpush3.bf16.msra.mxu0 %v547_v43 }
  0x46   :  { %549 = vmatprep.subr.bf16.mxu0 %v614_v28 }
  0x49   :  { %551 = vmatpush3.bf16.msra.mxu0 %v550_v59 }
  0x4a   :  { %552 = vmatprep.subr.bf16.mxu0 %v614_v28 }
  0x4d   :  { %554 = vmatpush3.bf16.msra.mxu0 %v553_v62 }
 0x103   :  { %v157_v51 = vpop.f32.mrb[0].mxu0 }
 0x104   :  { %v158_v52 = vadd.f32 %v157_v51, %v73_v49  ;;  %v159_v53 = vpop.f32.mrb[1].mxu0 }
 0x105   :  { %v160_v54 = vadd.f32 %v159_v53, %v77_v50 }
 0x106   :  { %v162_v56 = vmax.f32 %v158_v52, 0.0 }
 0x107   :  { %v163_v55 = vmax.f32 %v160_v54, 0.0 }
 0x109   :  { %267 = vmatprep.mubr.f32.mxu1 %v163_v55 }
 0x10a   :  { %268 = vmatmul.mubr.f32.vlgmr.msra.gmra.mrb[0].mxu1 %v162_v56 }
 0x1dd   :  { %v420_v63 = vpop.f32.mrb[0].mxu1 }
 0x1de   :  { %v421_v2 = vpop.f32.mrb[1].mxu1 }
 0x1df   :  { %v422_v3 = vadd.f32 %v421_v2, %v420_v63 }
 0x1e1   :  { %v270_v4 = vadd.f32 %v422_v3, %v386_v1 }
 0x1e3   :  { %v273_v5 = vmax.f32 %v270_v4, 0.0 }
 0x1e5   :  { %473 = vmatmul.mubr.f32.vlgmr.msra.gmra.mrb[2].mxu0 %v273_v5 }
 0x2b8   :  { %v363_v7 = vpop.f32.mrb[2].mxu0 }
 0x2b9   :  { %v364_v8 = vadd.f32 %v387_v6, %v363_v7  ;;  %v474_v9 = vpop.f32.mrb[3].mxu0 }
 0x2bb   :  { %367 = vst.msk [vmem:[#allocation5] sm:$0xff] %vm80_vm1, %v364_v8 }
 0x2bc   :  { %595 = shalt.err (!%p592_p12)
}
 0x2bd   :  { %s596_s9 = scalar_lea.hbm %s832_s7, 128 }
 0x2be   :  { %p597_p13 = scmp.ne.s32.totalorder %s832_s7, %s596_s9  ;;  %p600_p0 = scmp.lt.u32.totalorder %s596_s9, %s832_s7 }
 0x2c0   :  { %p602_p1 = pnand %p600_p0, %p597_p13 }
 0x2c2   :  { %605 = shalt.err (!%p602_p1)
}
 0x2c3   :  { %377 = dma.vmem_to_hbm [thread:$0]  %s375_s29, 128, %s832_s7, [#allocation4]  }
 0x2c4   :  { %608 = dma.done.wait [#allocation4], 128  }
 0x2c5   :  { %609 = vsyncadd [#allocation4], 4294967168 }
 0x2c6   :  { %381 = vsyncpa [#allocation3], 1 }
 0x2c7   :  { %382 = vsyncpa [#allocation4], 1 }

</bundles_post_ra>
